<compile_context>
chip_gen: v6e
topology: v6e:2x2x1
jax: 0.10.0
libtpu: 0.0.40
codegen_flags: <defaults>
</compile_context>

<pallas_src>
import functools

import numpy as np
import jax
import jax.numpy as jnp
from jax.experimental import pallas as pl
from jax.experimental.pallas import tpu as pltpu


# ---------------------------------------------------------------------------
# Deterministic parameter construction (numpy glue — mirrors GFB.initialize)
# ---------------------------------------------------------------------------
def gabor_kernel(frequency, sigma_x, sigma_y, theta=0.0, offset=0.0, ks=7):
    w = ks // 2
    grid_val = np.arange(-w, w + 1, dtype=np.float64)
    xg, yg = np.meshgrid(grid_val, grid_val)
    rotx = xg * np.cos(theta) + yg * np.sin(theta)
    roty = -xg * np.sin(theta) + yg * np.cos(theta)
    g = np.exp(-0.5 * (rotx ** 2 / sigma_x ** 2 + roty ** 2 / sigma_y ** 2))
    g /= 2.0 * np.pi * sigma_x * sigma_y
    g *= np.cos(2.0 * np.pi * frequency * rotx + offset)
    return g.astype(np.float32)


def make_gfb_weight(sf, theta, sigx, sigy, phase, in_channels, out_channels, ksize, rng):
    """Each output filter is a Gabor placed on one random input channel."""
    weight = np.zeros((out_channels, in_channels, ksize, ksize), dtype=np.float32)
    random_channel = rng.integers(0, in_channels, size=(out_channels,))
    for i in range(out_channels):
        weight[i, random_channel[i]] = gabor_kernel(
            frequency=sf[i], sigma_x=sigx[i], sigma_y=sigy[i],
            theta=theta[i], offset=phase[i], ks=ksize)
    return weight


# ---------------------------------------------------------------------------
# Pallas kernel: one (TM, K) @ (K, Cout) MXU matmul per grid step (+ epilogue)
# ---------------------------------------------------------------------------
def _gfb_matmul_kernel(p_ref, w_ref, o_ref, *, gain, apply_relu):
    # bf16 operands, f32 accumulation on the MXU.
    acc = jnp.dot(p_ref[...], w_ref[...], preferred_element_type=jnp.float32)
    if gain != 1.0:          # fused VOneBlock excitatory gain (f32, on accumulator)
        acc = acc * gain
    if apply_relu:           # fused VOneBlock nonlinearity
        acc = jnp.maximum(acc, 0.0)
    o_ref[...] = acc.astype(o_ref.dtype)


def gfb_forward(x, weight, *, stride=4, gain=1.0, apply_relu=False,
                tm=512, out_layout="NHWC"):
    """GFB.forward: conv2d(x, weight, None, stride, padding=ksize//2).

    x: (N, Cin, H, W) float32 (PyTorch NCHW); weight: (Cout, Cin, ks, ks) OIHW.
    Returns NHWC (N, OH, OW, Cout) by default (lane-dense channels-last);
    out_layout="NCHW" reproduces the PyTorch layout exactly.
    gain / apply_relu enable the fused VOneBlock epilogue (identity for GFB).

    Tile-size guidance: tm=512 is safe everywhere; v5e/v6e (128 MiB VMEM) can go
    2048+ (raise vmem_limit_bytes), keep tm<=1024 on v7x (64 MiB VMEM). Tiles
    here are tiny anyway: 2*(tm*K)*2B + 2*(tm*Cout)*4B + K*Cout*2B << 1 MiB.
    """
    N, C, H, W = x.shape
    Cout, Cw, ks, ks2 = weight.shape
    assert Cw == C and ks == ks2
    pad = ks // 2
    OH = (H + 2 * pad - ks) // stride + 1
    OW = (W + 2 * pad - ks) // stride + 1
    M = N * OH * OW
    K = ks * ks * C

    # ---- im2col (JAX glue), built directly in flattened-NHWC / (kh,kw,c) order
    x_nhwc = jnp.transpose(x, (0, 2, 3, 1))
    x_pad = jnp.pad(x_nhwc, ((0, 0), (pad, pad), (pad, pad), (0, 0)))
    taps = []
    for kh in range(ks):
        for kw in range(ks):
            taps.append(x_pad[:, kh:kh + stride * OH:stride,
                              kw:kw + stride * OW:stride, :])
    patches = jnp.stack(taps, axis=3)                     # (N, OH, OW, ks*ks, C)
    patches = patches.reshape(M, K).astype(jnp.bfloat16)  # K order: (kh, kw, c)

    # weights OIHW -> (kh, kw, c, o) -> (K, Cout), matching the patch K order
    w_flat = jnp.transpose(weight, (2, 3, 1, 0)).reshape(K, Cout).astype(jnp.bfloat16)

    # ---- tile M only; K and Cout stay at natural extents (no padded HBM copies)
    tm = max(8, min(int(tm), ((M + 7) // 8) * 8))
    tm = (tm // 8) * 8                                    # sublane-aligned tile
    grid_m = pl.cdiv(M, tm)
    M_pad = grid_m * tm
    if M_pad != M:
        patches = jnp.pad(patches, ((0, M_pad - M), (0, 0)))

    cost = pl.CostEstimate(
        flops=2 * M_pad * K * Cout,
        transcendentals=0,
        bytes_accessed=M_pad * K * 2 + K * Cout * 2 + M_pad * Cout * 4)

    out = pl.pallas_call(
        functools.partial(_gfb_matmul_kernel, gain=float(gain),
                          apply_relu=bool(apply_relu)),
        out_shape=jax.ShapeDtypeStruct((M_pad, Cout), jnp.float32),
        grid=(grid_m,),
        in_specs=[
            pl.BlockSpec((tm, K), lambda i: (i, 0)),      # double-buffered patches
            pl.BlockSpec((K, Cout), lambda i: (0, 0)),    # weights stay resident
        ],
        out_specs=pl.BlockSpec((tm, Cout), lambda i: (i, 0)),
        compiler_params=pltpu.CompilerParams(
            dimension_semantics=("parallel",)),           # megacore sharding on v7x
        cost_estimate=cost,
    )(patches, w_flat)

    y = out[:M].reshape(N, OH, OW, Cout)                  # flattened rows are NHWC
    if out_layout == "NCHW":
        y = jnp.transpose(y, (0, 3, 1, 2))                # only if a NCHW consumer needs it
    return y


# ---------------------------------------------------------------------------
if __name__ == "__main__":
    # GFB module configuration (module default stride=4), small demo shapes.
    in_channels = 3
    out_channels = 32
    ksize = 7
    stride = 4
    input_size = 32
    batch = 2

    # deterministic Gabor parameters (the arrays GFB.initialize takes)
    rng = np.random.default_rng(0)
    sf = rng.uniform(0.1, 0.5, out_channels)
    theta = rng.uniform(0.0, np.pi, out_channels)
    sigx = rng.uniform(1.0, 3.0, out_channels)
    sigy = rng.uniform(1.0, 3.0, out_channels)
    phase = rng.uniform(0.0, 2.0 * np.pi, out_channels)
    weight = make_gfb_weight(sf, theta, sigx, sigy, phase,
                             in_channels, out_channels, ksize, rng)

    key = jax.random.PRNGKey(0)
    x = jax.random.normal(key, (batch, in_channels, input_size, input_size),
                          dtype=jnp.float32)

    # tm=32 only to exercise a multi-step, double-buffered grid at toy sizes
    # (M = 2*8*8 = 128 -> grid of 4); production default is 512+.
    y = gfb_forward(x, jnp.asarray(weight), stride=stride, tm=32)
    y = jax.block_until_ready(y)

    # ---- numpy reference: direct conv (exact GFB.forward semantics) ----
    xn = np.asarray(x)
    pad = ksize // 2
    xp = np.pad(xn, ((0, 0), (0, 0), (pad, pad), (pad, pad)))
    OH = (input_size + 2 * pad - ksize) // stride + 1
    OW = OH
    ref = np.zeros((batch, out_channels, OH, OW), np.float32)
    for oh in range(OH):
        for ow in range(OW):
            patch = xp[:, :, oh * stride:oh * stride + ksize,
                       ow * stride:ow * stride + ksize]
            ref[:, :, oh, ow] = np.einsum('ncij,ocij->no', patch, weight)
    ref_nhwc = np.transpose(ref, (0, 2, 3, 1))            # compare in NHWC

    assert y.shape == (batch, OH, OW, out_channels), y.shape
    np.testing.assert_allclose(np.asarray(y), ref_nhwc, rtol=2e-2, atol=2e-2)

    print("KERNEL_OK")
</pallas_src>

<mosaic_0001>
module attributes {stable_mosaic.version = 11 : i64} {
  func.func @_gfb_matmul_kernel(%arg0: i32, %arg1: memref<32x147xbf16, #tpu.memory_space<vmem>>, %arg2: memref<147x32xbf16, #tpu.memory_space<vmem>>, %arg3: memref<32x32xf32, #tpu.memory_space<vmem>>) attributes {dimension_semantics = [#tpu.dimension_semantics<parallel>], iteration_bounds = array<i64: 4>, scalar_prefetch = 0 : i64, scratch_operands = 0 : i64, tpu.core_type = #tpu.core_type<tc>, window_params = [{transform_indices = @transform_0, window_bounds = array<i64: 32, 147>}, {pipeline_mode = #tpu.pipeline_mode<synchronous>, transform_indices = @transform_1, window_bounds = array<i64: 147, 32>}, {transform_indices = @transform_2, window_bounds = array<i64: 32, 32>}]} {
    %c0 = arith.constant 0 : index
    %c0_0 = arith.constant 0 : index
    %0 = vector.load %arg1[%c0, %c0_0] : memref<32x147xbf16, #tpu.memory_space<vmem>>, vector<32x147xbf16>
    %c0_1 = arith.constant 0 : index
    %c0_2 = arith.constant 0 : index
    %1 = vector.load %arg2[%c0_1, %c0_2] : memref<147x32xbf16, #tpu.memory_space<vmem>>, vector<147x32xbf16>
    %cst = arith.constant dense<0.000000e+00> : vector<32x32xf32>
    %2 = tpu.matmul %0, %1, %cst {dimension_numbers = #tpu.dot_dimension_numbers<[1], [0], [0], [1], [0, 0, 1, 1], [], []>} : vector<32x147xbf16>, vector<147x32xbf16>, vector<32x32xf32> -> vector<32x32xf32>
    %c0_3 = arith.constant 0 : index
    %c0_4 = arith.constant 0 : index
    %3 = vector.load %arg3[%c0_3, %c0_4] : memref<32x32xf32, #tpu.memory_space<vmem>>, vector<32x32xf32>
    tpu.vector_store %arg3[%c0_3, %c0_4], %2 {strides = array<i32>} : memref<32x32xf32, #tpu.memory_space<vmem>>, vector<32x32xf32>,
    return
  }
  func.func @transform_0(%arg0: i32) -> (i32, i32) {
    %c0_i32 = arith.constant 0 : i32
    %c0_i32_0 = arith.constant 0 : i32
    return %arg0, %c0_i32 : i32, i32
  }
  func.func @transform_1(%arg0: i32) -> (i32, i32) {
    %c0_i32 = arith.constant 0 : i32
    %c0_i32_0 = arith.constant 0 : i32
    %c0_i32_1 = arith.constant 0 : i32
    return %c0_i32, %c0_i32_0 : i32, i32
  }
  func.func @transform_2(%arg0: i32) -> (i32, i32) {
    %c0_i32 = arith.constant 0 : i32
    %c0_i32_0 = arith.constant 0 : i32
    return %arg0, %c0_i32 : i32, i32
  }
}

</mosaic_0001>

<bundles_post_ra>
// kernel: tpu_custom_call.1
= control target key start
LH: loop header
LB: loop body
LE: loop exit
PB: predicated region body
PF: predicated region fallthrough
CT: control target
= control target key end

     0   :  { %s473_s9 = smov 0   ;;  %s533_s0 = inlined_call_operand.vmem [shape: bf16[128,147], index: 0, kind: input, shape index: {}]   ;;  %s534_s1 = inlined_call_operand.vmem [shape: bf16[147,32], index: 1, kind: input, shape index: {}]   ;;  %s535_s2 = inlined_call_operand.vmem [shape: f32[128,32], index: 2, kind: output, shape index: {}]  }
   0x1 LB: > { %s373_s10 = sadd.s32 4294967295, %s454_s9   ;;  %p377_p0 = scmp.ge.s32.totalorder %s454_s9, 1  ;;  %s454_s9 = sphi %s473_s9, %s12_s9  }
   0x2   : > { %p114_p1 = scmp.lt.s32.totalorder %s454_s9, 5 }
   0x4   : > { %p115_p2 = pnand %p377_p0, %p114_p1 }
   0x5   : > { %s378_s17 = sshll.u32 (!%p115_p2), %s373_s10, 2 }
   0x6   : > { %118 = sbr.rel (%p115_p2) target bundleno = 251 (0xfb), region = 28  ;;  %p138_p3 = scmp.lt.s32.totalorder (!%p115_p2), %s378_s17, 15 }
   0xb   : > { %v432_v0 = vld [vmem:[%s534_s1 + $0x38] sm:$0xff]   ;;  %v456_v1 = vmov 0   ;;  %v433_v2 = vld [vmem:[%s534_s1 + $0x30] sm:$0xff]   ;;  %v434_v3 = vld [vmem:[%s534_s1 + $0x28] sm:$0xff]   ;;  %s537_s17 = smov (!%p138_p3, %s378_s17), 15  ;;  %vm249_vm0 = vcmask 154624  }
   0xc   : > { %263 = vmatprep.subr.bf16.mxu0 %v456_v1  ;;  %402 = vmatprep.subr.bf16.mxu1 %v456_v1  ;;  %v435_v4 = vld [vmem:[%s534_s1 + $0x20] sm:$0xff]   ;;  %s401_s20 = sshll.u32 %s537_s17, 3  ;;  %v436_v5 = vld [vmem:[%s534_s1 + $0x18] sm:$0xff]   ;;  %v437_v8 = vld [vmem:[%s534_s1 + $0x10] sm:$0xff]   ;;  %vm256_vm1 = vcmask 1040384   ;;  %vm257_vm2 = vcmask 1041408  }
   0xd   : > { %264 = vmatpush1.bf16.msra.mxu0 %v432_v0  ;;  %412 = vmatpush1.bf16.msra.mxu1 %v432_v0  ;;  %s501_s23 = scalar_lea.vmem %s533_s0, %s401_s20  ;;  %v438_v9 = vld [vmem:[%s534_s1 + $0x8] sm:$0xff]   ;;  %v457_v10 = vmov 65535   ;;  %v439_v12 = vld [vmem:[%s534_s1] sm:$0xff]   ;;  %s148_s11 = scalar_lea.vmem %s535_s2, %s401_s20  ;;  %vm312_vm3 = vcmask 261120  }
   0xe   : > { %265 = vmatprep.subr.bf16.mxu0 %v456_v1  ;;  %403 = vmatprep.subr.bf16.mxu1 %v456_v1  ;;  %v444_v6 = vld [vmem:[%s501_s23 + $0x4] ss:$8 sps:$4 sm:$0xff]   ;;  %v447_v7 = vld [vmem:[%s501_s23 + $0x14] ss:$8 sps:$4 sm:$0xff]   ;;  %v258_v11 = vsel %vm256_vm1, 4294967295, %v457_v10 }
   0xf   : > { %397 = vmatprep.mubr.msk.bf16.mxu0 %vm249_vm0, %v444_v6  ;;  %398 = vmatprep.mubr.msk.bf16.mxu1 %vm249_vm0, %v447_v7  ;;  %v440_v13 = vld [vmem:[%s534_s1 + $0x48] ss:$0 sps:$4 sm:$0x33]   ;;  %v259_v14 = vsel %vm257_vm2, %v258_v11, 0  ;;  %v441_v16 = vld [vmem:[%s534_s1 + $0x40] sm:$0xff]  }
  0x10   : > { %v261_v15 = vand.u32 %v440_v13, %v259_v14  ;;  %v442_v17 = vld [vmem:[%s501_s23] ss:$8 sps:$4 sm:$0xff]   ;;  %v445_v18 = vld [vmem:[%s501_s23 + $0x10] ss:$8 sps:$4 sm:$0xff]  }
  0x11   : > { %266 = vmatpush1.bf16.msra.mxu0 %v433_v2  ;;  %413 = vmatpush1.bf16.msra.mxu1 %v433_v2 }
  0x12   : > { %267 = vmatprep.subr.bf16.mxu0 %v456_v1  ;;  %404 = vmatprep.subr.bf16.mxu1 %v456_v1 }
  0x15   : > { %268 = vmatpush1.bf16.msra.mxu0 %v434_v3  ;;  %414 = vmatpush1.bf16.msra.mxu1 %v434_v3 }
  0x16   : > { %269 = vmatprep.subr.bf16.mxu0 %v456_v1  ;;  %405 = vmatprep.subr.bf16.mxu1 %v456_v1 }
  0x19   : > { %270 = vmatpush1.bf16.msra.mxu0 %v435_v4  ;;  %415 = vmatpush1.bf16.msra.mxu1 %v435_v4 }
  0x1a   : > { %271 = vmatprep.subr.bf16.mxu0 %v456_v1  ;;  %406 = vmatprep.subr.bf16.mxu1 %v456_v1 }
  0x1d   : > { %272 = vmatpush1.bf16.msra.mxu0 %v436_v5  ;;  %416 = vmatpush1.bf16.msra.mxu1 %v436_v5 }
  0x1e   : > { %273 = vmatprep.subr.bf16.mxu0 %v456_v1  ;;  %407 = vmatprep.subr.bf16.mxu1 %v456_v1 }
  0x21   : > { %274 = vmatpush1.bf16.msra.mxu0 %v437_v8  ;;  %417 = vmatpush1.bf16.msra.mxu1 %v437_v8 }
  0x22   : > { %275 = vmatprep.subr.bf16.mxu0 %v456_v1  ;;  %408 = vmatprep.subr.bf16.mxu1 %v456_v1 }
  0x25   : > { %276 = vmatpush1.bf16.msra.mxu0 %v438_v9  ;;  %418 = vmatpush1.bf16.msra.mxu1 %v438_v9 }
  0x26   : > { %277 = vmatprep.subr.bf16.mxu0 %v456_v1  ;;  %409 = vmatprep.subr.bf16.mxu1 %v456_v1 }
  0x29   : > { %278 = vmatpush1.bf16.msra.mxu0 %v439_v12  ;;  %419 = vmatpush1.bf16.msra.mxu1 %v439_v12 }
  0x2a   : > { %291 = vmatprep.subr.bf16.mxu0 %v456_v1  ;;  %410 = vmatprep.subr.bf16.mxu1 %v456_v1 }
  0x2d   : > { %292 = vmatpush2.bf16.msra.mxu0 %v261_v15  ;;  %420 = vmatpush2.bf16.msra.mxu1 %v261_v15 }
  0x2e   : > { %293 = vmatprep.subr.bf16.mxu0 %v456_v1  ;;  %411 = vmatprep.subr.bf16.mxu1 %v456_v1 }
  0x31   : > { %294 = vmatpush2.bf16.msra.mxu0 %v441_v16  ;;  %421 = vmatpush2.bf16.msra.mxu1 %v441_v16 }
  0x34   : > { %296 = vmatmul.mubr.bf16.vlgmr.msra.gmra.mxu0 %v442_v17  ;;  %304 = vmatmul.mubr.bf16.vlgmr.msra.gmra.mxu1 %v445_v18 }
  0xf4   : > { %v297_v19 = vpop.f32.mrf.mxu0  ;;  %v305_v20 = vpop.f32.mrf.mxu1 }
  0xf5   : > { %313 = vst.msk [vmem:[%s148_s11] sm:$0xff] %vm312_vm3, %v297_v19  ;;  %315 = vst.msk [vmem:[%s148_s11 + $0x10] sm:$0xff] %vm312_vm3, %v305_v20 }
  0xf6   : > { %v299_v21 = vpop.f32.mrf.mxu0  ;;  %v307_v22 = vpop.f32.mrf.mxu1 }
  0xf8   : > { %v300_v23 = vpop.f32.mrf.mxu0  ;;  %v308_v24 = vpop.f32.mrf.mxu1 }
  0xf9   : > { %314 = vst.msk [vmem:[%s148_s11 + $0x8] sm:$0xff] %vm312_vm3, %v300_v23  ;;  %316 = vst.msk [vmem:[%s148_s11 + $0x18] sm:$0xff] %vm312_vm3, %v308_v24 }
  0xfa   : > { %v302_v25 = vpop.f32.mrf.mxu0  ;;  %v310_v26 = vpop.f32.mrf.mxu1 }
  0xfb PF: > { %s12_s9 = sadd.s32 1, %s454_s9  }
  0xfc   : > { %p9_p4 = scmp.ge.s32.totalorder %s12_s9, 6  }
  0xfe   :  { %11 = sbr.rel (!%p9_p4) target bundleno = 1 (0x1), region = 58 }

</bundles_post_ra>
